<compile_context>
chip_gen: v6e
topology: v6e:2x2x1
jax: 0.10.0
libtpu: 0.0.40
codegen_flags: <defaults>
</compile_context>

<pallas_src>
import jax
import jax.numpy as jnp
from jax.experimental import pallas as pl
from jax.experimental.pallas import tpu as pltpu

LANE = 128
SUBLANE = 8


def perceptron_kernel(w_ref, b_ref, x_ref, o_ref):
    """VPU/EUP perceptron on a sublane/lane-dense batch tile.

    w_ref : SMEM (OUT, IN)      -- weights, pre-scaled by 0.5 (scalar reads)
    b_ref : SMEM (OUT,)         -- bias,    pre-scaled by 0.5 (scalar reads)
    x_ref : VMEM (IN, TR, 128)  -- feature-major batch tile (dense (8k,128) blocks)
    o_ref : VMEM (OUT, TR, 128) -- output tile (dense (8k,128) blocks)
    """
    n_out, n_in = w_ref.shape                       # static: (1, 2)
    for o in range(n_out):                          # tiny static loops
        # z/2 = sum_i x[i] * (W[o,i]/2) + b[o]/2  (scalar-broadcast FMAs, VPU)
        zh = x_ref[0] * w_ref[o, 0]
        for i in range(1, n_in):
            zh = zh + x_ref[i] * w_ref[o, i]
        zh = zh + b_ref[o]
        # sigmoid(z) = 0.5 * tanh(z/2) + 0.5  -- single EUP transcendental.
        o_ref[o] = (0.5 * jnp.tanh(zh) + 0.5).astype(o_ref.dtype)


def _round_up(a, m):
    return -(-a // m) * m


def perceptron_forward(x, weight, bias, *, block_rows=2048):
    """x: (B, IN) f32, weight: (OUT, IN) f32, bias: (OUT,) f32 -> (B, OUT) f32."""
    batch, in_f = x.shape
    out_f, in_f_w = weight.shape
    assert in_f == in_f_w

    # --- choose a sublane/lane-dense tiling of the batch ---------------------
    rows = -(-batch // LANE)                 # number of 128-lane rows
    rows8 = _round_up(rows, SUBLANE)         # sublane-dense row count
    if rows8 <= SUBLANE:
        tr = rows8                           # toy batch: one minimal dense tile
    else:
        # At least 2 grid steps (v7x megacore), capped at block_rows rows
        # (~256K samples / ~6 MiB double-buffered VMEM per step).
        tr = min(block_rows, _round_up(-(-rows8 // 2), SUBLANE))
    rows_p = _round_up(rows8, tr)
    batch_p = rows_p * LANE
    grid = (rows_p // tr,)

    # Pad the batch with zeros; padded rows are sliced off after the kernel.
    if batch_p != batch:
        x = jnp.pad(x, ((0, batch_p - batch), (0, 0)))

    # Feature-major, dense (rows, 128) planes.  NOTE: x.T is a real XLA
    # transpose; for huge batches callers should supply feature-major input.
    x_planes = x.T.reshape(in_f, rows_p, LANE)

    # Fold the tanh-sigmoid pre-scale into the (tiny) parameters.
    w_half = (0.5 * weight).astype(jnp.float32)
    b_half = (0.5 * bias).astype(jnp.float32)

    out_planes = pl.pallas_call(
        perceptron_kernel,
        out_shape=jax.ShapeDtypeStruct((out_f, rows_p, LANE), x.dtype),
        grid=grid,
        in_specs=[
            # Tiny parameters as whole arrays in SMEM (scalar reads in-kernel).
            pl.BlockSpec(memory_space=pltpu.MemorySpace.SMEM),   # weight (OUT, IN)
            pl.BlockSpec(memory_space=pltpu.MemorySpace.SMEM),   # bias   (OUT,)
            # Dense (IN, TR, 128) input tile; auto double-buffered.
            # (On v7x one can sweep pipeline depth here via
            #  pipeline_mode=pl.Buffered(3) once tuned.)
            pl.BlockSpec((in_f, tr, LANE), lambda i: (0, i, 0)),
        ],
        out_specs=pl.BlockSpec((out_f, tr, LANE), lambda i: (0, i, 0)),
        compiler_params=pltpu.CompilerParams(
            # Batch tiles are independent -> shard across v7x's 2 TensorCores;
            # harmless on v5e / v6e.
            dimension_semantics=("parallel",)),
    )(w_half, b_half, x_planes)

    # (OUT, rows, 128) -> (batch_p, OUT); for OUT=1 the .T is a free reshape.
    out = out_planes.reshape(out_f, batch_p).T
    return out[:batch]


if __name__ == "__main__":
    key = jax.random.PRNGKey(0)
    kx, kw, kb = jax.random.split(key, 3)

    batch, in_features, out_features = 128, 2, 1

    # Deterministic parameter init mimicking nn.Linear's default
    # uniform(-1/sqrt(fan_in), 1/sqrt(fan_in)).
    bound = 1.0 / jnp.sqrt(jnp.float32(in_features))
    weight = jax.random.uniform(
        kw, (out_features, in_features), jnp.float32, -bound, bound)
    bias = jax.random.uniform(
        kb, (out_features,), jnp.float32, -bound, bound)

    x = jax.random.normal(kx, (batch, in_features), jnp.float32)

    out = perceptron_forward(x, weight, bias)
    out = jax.block_until_ready(out)

    # Pure-JAX reference check (exact sigmoid; kernel uses the mathematically
    # equivalent 0.5*tanh(z/2)+0.5 form, so tolerances can be tight).
    ref = jax.nn.sigmoid(x @ weight.T + bias[None, :])
    assert out.shape == (batch, out_features)
    assert jnp.allclose(out, ref, atol=1e-5, rtol=1e-5)

    print("KERNEL_OK")
</pallas_src>

<mosaic_0001>
module attributes {stable_mosaic.version = 11 : i64} {
  func.func @perceptron_kernel(%arg0: i32, %arg1: memref<1x2xf32, #tpu.memory_space<smem>>, %arg2: memref<1xf32, #tpu.memory_space<smem>>, %arg3: memref<2x8x128xf32, #tpu.memory_space<vmem>>, %arg4: memref<1x8x128xf32, #tpu.memory_space<vmem>>) attributes {dimension_semantics = [#tpu.dimension_semantics<parallel>], iteration_bounds = array<i64: 1>, scalar_prefetch = 0 : i64, scratch_operands = 0 : i64, tpu.core_type = #tpu.core_type<tc>, window_params = [{transform_indices = @transform_0, window_bounds = array<i64: 1, 2>}, {transform_indices = @transform_1, window_bounds = array<i64: 1>}, {transform_indices = @transform_2, window_bounds = array<i64: 2, 8, 128>}, {transform_indices = @transform_3, window_bounds = array<i64: 1, 8, 128>}]} {
    %c0 = arith.constant 0 : index
    %c0_0 = arith.constant 0 : index
    %c0_1 = arith.constant 0 : index
    %0 = vector.load %arg3[%c0, %c0_0, %c0_1] : memref<2x8x128xf32, #tpu.memory_space<vmem>>, vector<1x8x128xf32>
    %1 = vector.shape_cast %0 : vector<1x8x128xf32> to vector<8x128xf32>
    %c0_2 = arith.constant 0 : index
    %c0_3 = arith.constant 0 : index
    %2 = memref.load %arg1[%c0_2, %c0_3] : memref<1x2xf32, #tpu.memory_space<smem>>
    %3 = vector.broadcast %2 : f32 to vector<8x128xf32>
    %4 = arith.mulf %1, %3 : vector<8x128xf32>
    %c1 = arith.constant 1 : index
    %c0_4 = arith.constant 0 : index
    %c0_5 = arith.constant 0 : index
    %5 = vector.load %arg3[%c1, %c0_4, %c0_5] : memref<2x8x128xf32, #tpu.memory_space<vmem>>, vector<1x8x128xf32>
    %6 = vector.shape_cast %5 : vector<1x8x128xf32> to vector<8x128xf32>
    %c0_6 = arith.constant 0 : index
    %c1_7 = arith.constant 1 : index
    %7 = memref.load %arg1[%c0_6, %c1_7] : memref<1x2xf32, #tpu.memory_space<smem>>
    %8 = vector.broadcast %7 : f32 to vector<8x128xf32>
    %9 = arith.mulf %6, %8 : vector<8x128xf32>
    %10 = arith.addf %4, %9 : vector<8x128xf32>
    %c0_8 = arith.constant 0 : index
    %11 = memref.load %arg2[%c0_8] : memref<1xf32, #tpu.memory_space<smem>>
    %12 = vector.broadcast %11 : f32 to vector<8x128xf32>
    %13 = arith.addf %10, %12 : vector<8x128xf32>
    %14 = math.tanh %13 : vector<8x128xf32>
    %cst = arith.constant 5.000000e-01 : f32
    %15 = vector.broadcast %cst : f32 to vector<8x128xf32>
    %16 = arith.mulf %15, %14 : vector<8x128xf32>
    %cst_9 = arith.constant 5.000000e-01 : f32
    %17 = vector.broadcast %cst_9 : f32 to vector<8x128xf32>
    %18 = arith.addf %16, %17 : vector<8x128xf32>
    %c0_10 = arith.constant 0 : index
    %c0_11 = arith.constant 0 : index
    %c0_12 = arith.constant 0 : index
    %19 = vector.load %arg4[%c0_10, %c0_11, %c0_12] : memref<1x8x128xf32, #tpu.memory_space<vmem>>, vector<1x8x128xf32>
    %20 = vector.shape_cast %19 : vector<1x8x128xf32> to vector<8x128xf32>
    %21 = vector.shape_cast %18 : vector<8x128xf32> to vector<1x8x128xf32>
    tpu.vector_store %arg4[%c0_10, %c0_11, %c0_12], %21 {strides = array<i32>} : memref<1x8x128xf32, #tpu.memory_space<vmem>>, vector<1x8x128xf32>,
    return
  }
  func.func @transform_0(%arg0: i32) -> (i32, i32) {
    %c0_i32 = arith.constant 0 : i32
    %c0_i32_0 = arith.constant 0 : i32
    %c0_i32_1 = arith.constant 0 : i32
    return %c0_i32, %c0_i32_0 : i32, i32
  }
  func.func @transform_1(%arg0: i32) -> i32 {
    %c0_i32 = arith.constant 0 : i32
    %c0_i32_0 = arith.constant 0 : i32
    return %c0_i32 : i32
  }
  func.func @transform_2(%arg0: i32) -> (i32, i32, i32) {
    %c0_i32 = arith.constant 0 : i32
    %c0_i32_0 = arith.constant 0 : i32
    %c0_i32_1 = arith.constant 0 : i32
    return %c0_i32, %arg0, %c0_i32_0 : i32, i32, i32
  }
  func.func @transform_3(%arg0: i32) -> (i32, i32, i32) {
    %c0_i32 = arith.constant 0 : i32
    %c0_i32_0 = arith.constant 0 : i32
    %c0_i32_1 = arith.constant 0 : i32
    return %c0_i32, %arg0, %c0_i32_0 : i32, i32, i32
  }
}

</mosaic_0001>

<bundles_post_ra>
// kernel: tpu_custom_call.1
= control target key start
LH: loop header
LB: loop body
LE: loop exit
PB: predicated region body
PF: predicated region fallthrough
CT: control target
= control target key end

     0   :  { %9 = vsyncpa [#allocation6], 0  ;;  %s179_s0 = inlined_call_operand.vmem [shape: f32[1,2], index: 0, kind: input, shape index: {}]   ;;  %s180_s1 = inlined_call_operand.<no memory space> [shape: f32[1], index: 1, kind: input, shape index: {}]   ;;  %s181_s2 = inlined_call_operand.hbm [shape: f32[2,8,128], index: 2, kind: input, shape index: {}]   ;;  %s182_s3 = inlined_call_operand.hbm [shape: f32[1,8,128], index: 3, kind: output, shape index: {}]  }
   0x1   :  { %10 = vsyncpa [#allocation4], 0 }
   0x2   :  { %11 = vsyncpa [#allocation5], 0  ;;  %s18_s14 = sshll.u32 %s179_s0, 4  ;;  %s19_s14 = int_to_ptr.vmem [resolvable:$true] %s18_s14 }
   0x3   :  { %s84_s15 = scalar_lea.vmem %s19_s14, 16  ;;  %p89_p1 = scmp.lt.s32.totalorder %s19_s14, %s19_s14 }
   0x4   :  { %p85_p0 = scmp.ne.s32.totalorder %s19_s14, %s84_s15  ;;  %p90_p2 = scmp.lt.s32.totalorder %s84_s15, %s84_s15 }
   0x6   :  { %p91_p3 = por %p90_p2, %p89_p1 }
   0x8   :  { %p92_p4 = pnand %p91_p3, %p85_p0 }
   0xa   :  { %95 = shalt.err (!%p92_p4)
}
   0xb   :  { %s142_s16 = smov [#allocation3]   ;;  %s143_s17 = smov [#allocation7]  }
   0xc   :  { %21 = dma.vmem_to_smem %s19_s14, 16, %s142_s16, [#allocation6]  }
   0xd   :  { %s29_s18 = sshll.u32 %s143_s17, 4  ;;  %s30_s18 = int_to_ptr.vmem [resolvable:$true] %s29_s18 }
   0xe   :  { %s104_s19 = scalar_lea.vmem %s30_s18, 256  ;;  %p109_p6 = scmp.lt.s32.totalorder %s30_s18, %s30_s18 }
   0xf   :  { %p105_p5 = scmp.ne.s32.totalorder %s30_s18, %s104_s19  ;;  %p110_p7 = scmp.lt.s32.totalorder %s104_s19, %s104_s19 }
  0x11   :  { %p111_p8 = por %p110_p7, %p109_p6 }
  0x13   :  { %p112_p9 = pnand %p111_p8, %p105_p5 }
  0x15   :  { %115 = shalt.err (!%p112_p9)
}
  0x16   :  { %s144_s0 = smov 128   ;;  %s145_s20 = smov 8  }
  0x17   :  { %35 = dma.hbm_to_vmem [thread:$0]  %s181_s2, 256, %s30_s18, [#allocation4], %s144_s0, %s144_s0, %s145_s20  }
  0x18   :  { %136 = dma.done.wait [#allocation6], 16  }
  0x19   :  { %137 = vsyncadd [#allocation6], 4294967280 }
  0x1a   :  { %138 = dma.done.wait [#allocation4], 256  }
  0x1b   :  { %139 = vsyncadd [#allocation4], 4294967040 }
  0x1c   :  { %42 = sfence }
  0x1d   :  { %s44_s23 = sld [smem:[#allocation3]]  ;;  %v43_v0 = vld [vmem:[#allocation7] sm:$0xff]  ;;  %v48_v1 = vld [vmem:[#allocation7 + $0x8] sm:$0xff]  ;;  %v54_v6 = vstv %s180_s1  ;;  %s146_s2 = smov [#allocation8]  }
  0x1e   :  { %s76_s24 = sld [smem:[#allocation3 + $0x1]]  ;;  %s66_s27 = sshll.u32 %s146_s2, 4  ;;  %s67_s27 = int_to_ptr.vmem [resolvable:$true] %s66_s27 }
  0x1f   :  { %s116_s28 = scalar_lea.vmem %s67_s27, 128  ;;  %p121_p11 = scmp.lt.s32.totalorder %s67_s27, %s67_s27 }
  0x20   :  { %p117_p10 = scmp.ne.s32.totalorder %s67_s27, %s116_s28  ;;  %p122_p12 = scmp.lt.s32.totalorder %s116_s28, %s116_s28 }
  0x22   :  { %p123_p13 = por %p122_p12, %p121_p11 }
  0x23   :  { %v45_v2 = vstv %s44_s23 }
  0x24   :  { %v46_v3 = vmul.f32 %v45_v2, %v43_v0  ;;  %v50_v4 = vstv %s76_s24  ;;  %p124_p0 = pnand %p123_p13, %p117_p10 }
  0x25   :  { %v51_v5 = vmul.f32 %v50_v4, %v48_v1 }
  0x27   :  { %v52_v7 = vadd.f32 %v51_v5, %v46_v3 }
  0x29   :  { %v55_v8 = vadd.f32 %v54_v6, %v52_v7 }
  0x2b   :  { %82 = vtanh.f32 %v55_v8 }
  0x38   :  { %v83_v9 = vpop.eup %82 }
  0x39   :  { %v57_v10 = vmul.f32 0.5, %v83_v9 }
  0x3b   :  { %v58_v11 = vadd.f32 0.5, %v57_v10 }
  0x3d   :  { %59 = vst [vmem:[#allocation8] sm:$0xff] %v58_v11 }
  0x3e   :  { %127 = shalt.err (!%p124_p0)
}
  0x3f   :  { %69 = dma.vmem_to_hbm [thread:$0]  %s67_s27, 128, %s182_s3, [#allocation5]  }
  0x40   :  { %140 = dma.done.wait [#allocation5], 128  }
  0x41   :  { %141 = vsyncadd [#allocation5], 4294967168 }
  0x42   :  { %73 = vsyncpa [#allocation4], 1 }
  0x43   :  { %74 = vsyncpa [#allocation5], 1 }
  0x44   :  { %75 = vsyncpa [#allocation6], 1 }

</bundles_post_ra>
